<compile_context>
chip_gen: v6e
topology: v6e:2x2x1
jax: 0.10.0
libtpu: 0.0.40
codegen_flags: <defaults>
</compile_context>

<pallas_src>
import math
from functools import lru_cache

import jax
import jax.numpy as jnp
import numpy as np
from jax.experimental import pallas as pl
from jax.experimental.pallas import tpu as pltpu


def _build_rows(pos_dim, h, w, lane_pad):
    """Host-side per-lane scale / bias rows (1, lane_pad), zero-padded.

    For output element (y, lane) with lane = x*pos_dim + c the kernel computes
        sin(y * scale[lane] + bias[lane])
    which reproduces the PyTorch table:
      c <  dim_h : sin/cos(y * div_term_h[c//2])   (scale = div_h, bias = phase)
      c >= dim_h : sin/cos(x * div_term_w[cc//2])  (scale = 0, bias = x*div_w + phase)
    with phase = 0 for sin channels and pi/2 for cos channels.
    """
    dim_h = pos_dim // 2
    dim_w = pos_dim - dim_h
    div_h = (np.exp(np.arange(0, dim_h, 2, dtype=np.float32)
                    * np.float32(-(math.log(10000.0) / dim_h)))
             if dim_h > 0 else np.zeros((0,), np.float32))
    div_w = (np.exp(np.arange(0, dim_w, 2, dtype=np.float32)
                    * np.float32(-(math.log(10000.0) / dim_w)))
             if dim_w > 0 else np.zeros((0,), np.float32))
    half_pi = np.float32(np.pi / 2.0)

    scale_c = np.zeros((pos_dim,), np.float32)   # multiplies y
    xmul_c = np.zeros((pos_dim,), np.float32)    # multiplies x (folded into bias)
    phase_c = np.zeros((pos_dim,), np.float32)   # 0 -> sin, pi/2 -> cos
    for c in range(dim_h):
        scale_c[c] = div_h[c // 2]
        phase_c[c] = 0.0 if (c % 2 == 0) else half_pi
    for c in range(dim_h, pos_dim):
        cc = c - dim_h
        xmul_c[c] = div_w[cc // 2]
        phase_c[c] = 0.0 if (cc % 2 == 0) else half_pi

    lane = w * pos_dim
    x_idx = np.arange(w, dtype=np.float32)[:, None]                    # (w, 1)
    scale_row = np.zeros((1, lane_pad), np.float32)
    bias_row = np.zeros((1, lane_pad), np.float32)
    scale_row[0, :lane] = np.tile(scale_c, w)
    bias_row[0, :lane] = (phase_c[None, :] + x_idx * xmul_c[None, :]).reshape(-1)
    return scale_row, bias_row


def _choose_tile_h(h, lane_pad, out_dtype, target_steps=8,
                   tile_budget_bytes=1 << 20):
    """Row-tile: multiple of the sublane packing, ~4-8 grid steps, <=~1 MiB/tile
    (v7x scoped-VMEM safe), and an exact divisor of h."""
    itemsize = np.dtype(out_dtype).itemsize
    sub = max(8, 32 // max(itemsize, 1))          # 8 (f32), 16 (bf16), 32 (8-bit)
    if h <= sub or h % sub != 0:
        return h                                  # single full-extent row block
    rows_budget = max(sub, (tile_budget_bytes // (lane_pad * 4)) // sub * sub)
    rows_steps = max(sub, pl.cdiv(h, target_steps) // sub * sub)
    tile = max(sub, min(h, rows_budget, rows_steps))
    while h % tile != 0:                          # prefer exact divisors of h
        tile -= sub
    return max(tile, sub)


def _pe_kernel(y_ref, scale_ref, bias_ref, o_ref):
    # y_ref: (tile_h, 1) f32 row indices; scale/bias: (1, lane_pad) f32 rows,
    # resident across grid steps (constant index_map). One fused
    # mul + add + sin + cast per element; stores are full lane-width.
    o_ref[...] = jnp.sin(y_ref[...] * scale_ref[...] + bias_ref[...]
                         ).astype(o_ref.dtype)


@lru_cache(maxsize=None)
def _pos_enc_table(pos_dim, h, w, dtype_name, tile_h):
    dtype = np.dtype(dtype_name)
    lane = w * pos_dim
    lane_pad = pl.cdiv(lane, 128) * 128           # lane-dense, unmasked stores
    if tile_h is None:
        tile_h = _choose_tile_h(h, lane_pad, dtype)
    assert h % tile_h == 0, "tile_h must divide h"
    grid_h = h // tile_h

    scale_row, bias_row = _build_rows(pos_dim, h, w, lane_pad)
    y_col = np.arange(h, dtype=np.float32).reshape(h, 1)

    table = pl.pallas_call(
        _pe_kernel,
        out_shape=jax.ShapeDtypeStruct((h, lane_pad), dtype),
        grid_spec=pltpu.PrefetchScalarGridSpec(
            num_scalar_prefetch=0,
            grid=(grid_h,),
            in_specs=[
                pl.BlockSpec((tile_h, 1), lambda i: (i, 0)),      # y column
                pl.BlockSpec((1, lane_pad), lambda i: (0, 0)),    # scale (resident)
                pl.BlockSpec((1, lane_pad), lambda i: (0, 0)),    # bias  (resident)
            ],
            out_specs=pl.BlockSpec((tile_h, lane_pad), lambda i: (i, 0)),
        ),
        compiler_params=pltpu.CompilerParams(
            dimension_semantics=("parallel",)),
    )(jnp.asarray(y_col), jnp.asarray(scale_row), jnp.asarray(bias_row))

    if lane_pad != lane:
        table = table[:, :lane]
    # (h, w*pos_dim) -> (h*w, pos_dim): same row-major layout as the PyTorch
    # reshape(h*w, pos_dim).
    return table.reshape(h * w, pos_dim)


def sincos_2d_pos_encoding_concat(batch_size, pos_dim, h, w,
                                  dtype=jnp.float32, tile_h=None):
    """Equivalent of SinCos2DPositionalEncodingConcat(pos_dim, h, w)
    .get_patch_encodings(batch_size) -> (B, h*w, pos_dim)."""
    table = _pos_enc_table(pos_dim, h, w, np.dtype(dtype).name, tile_h)
    # Batch axis is a broadcast of the cached, batch-invariant table; consumers
    # should fuse the concat rather than materialize B copies in HBM.
    return jnp.broadcast_to(table[None], (batch_size, h * w, pos_dim))


def _reference(batch_size, pos_dim, h, w):
    """NumPy re-implementation of the PyTorch __init__ + get_patch_encodings."""
    y_pos = np.arange(h).reshape(h, 1).repeat(w, axis=1).astype(np.float32)
    x_pos = np.arange(w).reshape(1, w).repeat(h, axis=0).astype(np.float32)
    dim_h = pos_dim // 2
    dim_w = pos_dim - dim_h
    div_term_h = np.exp(np.arange(0, dim_h, 2).astype(np.float32)
                        * -(math.log(10000.0) / dim_h))
    div_term_w = np.exp(np.arange(0, dim_w, 2).astype(np.float32)
                        * -(math.log(10000.0) / dim_w))
    pos_enc = np.zeros((h, w, pos_dim), dtype=np.float32)
    for i in range(0, dim_h, 2):
        if i < dim_h:
            pos_enc[:, :, i] = np.sin(y_pos * div_term_h[i // 2])
            if i + 1 < dim_h:
                pos_enc[:, :, i + 1] = np.cos(y_pos * div_term_h[i // 2])
    for i in range(0, dim_w, 2):
        if i + dim_h < pos_dim:
            pos_enc[:, :, i + dim_h] = np.sin(x_pos * div_term_w[i // 2])
            if i + dim_h + 1 < pos_dim:
                pos_enc[:, :, i + dim_h + 1] = np.cos(x_pos * div_term_w[i // 2])
    pos_enc = pos_enc.reshape(h * w, pos_dim)
    return np.broadcast_to(pos_enc[None], (batch_size, h * w, pos_dim)).copy()


if __name__ == "__main__":
    key = jax.random.PRNGKey(0)
    B, POS_DIM, H, W = 2, 32, 16, 16
    # Hypothetical patch-embedding tensor this PE would be concatenated with
    # (the module's table generation only consumes the batch size).
    x = jax.random.normal(key, (B, H * W, POS_DIM), dtype=jnp.float32)

    # Case 1: default tiling -> two 8-row tiles (multi-step grid, lane = 512).
    out = jax.block_until_ready(sincos_2d_pos_encoding_concat(B, POS_DIM, H, W))
    ref = _reference(B, POS_DIM, H, W)
    np.testing.assert_allclose(np.asarray(out), ref, rtol=1e-5, atol=2e-5)

    # Case 2: single full-height tile (explicit override path).
    out2 = jax.block_until_ready(
        sincos_2d_pos_encoding_concat(B, POS_DIM, H, W, tile_h=16))
    np.testing.assert_allclose(np.asarray(out2), ref, rtol=1e-5, atol=2e-5)

    # Case 3: odd dim_h/dim_w, non-128-multiple lane width (216 -> padded 256).
    B3, PD3, H3, W3 = 3, 18, 8, 12
    out3 = jax.block_until_ready(sincos_2d_pos_encoding_concat(B3, PD3, H3, W3))
    np.testing.assert_allclose(np.asarray(out3), _reference(B3, PD3, H3, W3),
                               rtol=1e-5, atol=2e-5)

    # Case 4: bf16 output (halves HBM write bytes on bandwidth-bound chips).
    out4 = jax.block_until_ready(
        sincos_2d_pos_encoding_concat(B, POS_DIM, H, W, dtype=jnp.bfloat16))
    np.testing.assert_allclose(np.asarray(out4).astype(np.float32), ref,
                               rtol=0.0, atol=1e-2)

    print("KERNEL_OK")
</pallas_src>

<mosaic_0001>
module attributes {stable_mosaic.version = 11 : i64} {
  func.func @_pe_kernel(%arg0: i32, %arg1: memref<8x1xf32, #tpu.memory_space<vmem>>, %arg2: memref<1x512xf32, #tpu.memory_space<vmem>>, %arg3: memref<1x512xf32, #tpu.memory_space<vmem>>, %arg4: memref<8x512xf32, #tpu.memory_space<vmem>>) attributes {dimension_semantics = [#tpu.dimension_semantics<parallel>], iteration_bounds = array<i64: 2>, scalar_prefetch = 0 : i64, scratch_operands = 0 : i64, tpu.core_type = #tpu.core_type<tc>, window_params = [{transform_indices = @transform_0, window_bounds = array<i64: 8, 1>}, {pipeline_mode = #tpu.pipeline_mode<synchronous>, transform_indices = @transform_1, window_bounds = array<i64: 1, 512>}, {pipeline_mode = #tpu.pipeline_mode<synchronous>, transform_indices = @transform_2, window_bounds = array<i64: 1, 512>}, {transform_indices = @transform_3, window_bounds = array<i64: 8, 512>}]} {
    %c0 = arith.constant 0 : index
    %c0_0 = arith.constant 0 : index
    %0 = vector.load %arg1[%c0, %c0_0] : memref<8x1xf32, #tpu.memory_space<vmem>>, vector<8x1xf32>
    %c0_1 = arith.constant 0 : index
    %c0_2 = arith.constant 0 : index
    %1 = vector.load %arg2[%c0_1, %c0_2] : memref<1x512xf32, #tpu.memory_space<vmem>>, vector<1x512xf32>
    %2 = vector.broadcast %0 : vector<8x1xf32> to vector<8x512xf32>
    %3 = vector.broadcast %1 : vector<1x512xf32> to vector<8x512xf32>
    %4 = arith.mulf %2, %3 : vector<8x512xf32>
    %c0_3 = arith.constant 0 : index
    %c0_4 = arith.constant 0 : index
    %5 = vector.load %arg3[%c0_3, %c0_4] : memref<1x512xf32, #tpu.memory_space<vmem>>, vector<1x512xf32>
    %6 = vector.broadcast %5 : vector<1x512xf32> to vector<8x512xf32>
    %7 = arith.addf %4, %6 : vector<8x512xf32>
    %8 = math.sin %7 : vector<8x512xf32>
    %c0_5 = arith.constant 0 : index
    %c0_6 = arith.constant 0 : index
    %9 = vector.load %arg4[%c0_5, %c0_6] : memref<8x512xf32, #tpu.memory_space<vmem>>, vector<8x512xf32>
    tpu.vector_store %arg4[%c0_5, %c0_6], %8 {strides = array<i32>} : memref<8x512xf32, #tpu.memory_space<vmem>>, vector<8x512xf32>,
    return
  }
  func.func @transform_0(%arg0: i32) -> (i32, i32) {
    %c0_i32 = arith.constant 0 : i32
    %c0_i32_0 = arith.constant 0 : i32
    return %arg0, %c0_i32 : i32, i32
  }
  func.func @transform_1(%arg0: i32) -> (i32, i32) {
    %c0_i32 = arith.constant 0 : i32
    %c0_i32_0 = arith.constant 0 : i32
    %c0_i32_1 = arith.constant 0 : i32
    return %c0_i32, %c0_i32_0 : i32, i32
  }
  func.func @transform_2(%arg0: i32) -> (i32, i32) {
    %c0_i32 = arith.constant 0 : i32
    %c0_i32_0 = arith.constant 0 : i32
    %c0_i32_1 = arith.constant 0 : i32
    return %c0_i32, %c0_i32_0 : i32, i32
  }
  func.func @transform_3(%arg0: i32) -> (i32, i32) {
    %c0_i32 = arith.constant 0 : i32
    %c0_i32_0 = arith.constant 0 : i32
    return %arg0, %c0_i32 : i32, i32
  }
}

</mosaic_0001>

<bundles_post_ra>
// kernel: tpu_custom_call.1
= control target key start
LH: loop header
LB: loop body
LE: loop exit
PB: predicated region body
PF: predicated region fallthrough
CT: control target
= control target key end

     0   :  { %8 = vsyncpa [#allocation3], 0  ;;  %s1329_s0 = inlined_call_operand.vmem [shape: f32[16,1], index: 0, kind: input, shape index: {}]   ;;  %s1330_s1 = inlined_call_operand.vmem [shape: f32[1,512], index: 1, kind: input, shape index: {}]   ;;  %s1331_s2 = inlined_call_operand.vmem [shape: f32[1,512], index: 2, kind: input, shape index: {}]   ;;  %s1332_s3 = inlined_call_operand.hbm [shape: f32[16,512], index: 3, kind: output, shape index: {}]  }
   0x1   :  { %10 = vsyncpa [#allocation3 + $0x1], 0  ;;  %s915_s12 = smov 0   ;;  %s917_s13 = smov 0  }
   0x2   :  { %s919_s14 = smov 0   ;;  %s921_s15 = smov 0  }
   0x3 LB: > { %s936_s16 = sadd.s32 4294967295, %s885_s15   ;;  %s718_s17 = sadd.s32 4294967294, %s885_s15   ;;  %s885_s15 = sphi %s921_s15, %s1342_s15   ;;  %s881_s14 = sphi %s919_s14, %s1341_s14   ;;  %s877_s13 = sphi %s917_s13, %s1340_s13   ;;  %s873_s12 = sphi %s915_s12, %s1339_s12  }
   0x4   : > { %s940_s18 = sadd.s32 1, %s885_s15   ;;  %s91_s19 = sadd.s32 1, %s881_s14 }
   0x5   : > { %s88_s20 = ssub.s32 %s885_s15, %s940_s18  ;;  %p101_p0 = scmp.ne.s32.totalorder %s881_s14, %s877_s13 }
   0x6   : > { %p89_p1 = scmp.eq.s32.totalorder %s88_s20, 0  ;;  %p102_p2 = scmp.eq.s32.totalorder %s936_s16, 1 }
   0x7   : > { %p107_p3 = scmp.ne.s32.totalorder %s877_s13, %s873_s12  ;;  %p108_p4 = scmp.eq.s32.totalorder %s718_s17, 1 }
   0x8   : > { %s951_s21 = scalar_select %p89_p1, %s881_s14, %s91_s19  }
   0x9   : > { %p953_p5 = por %p102_p2, %p101_p0  ;;  %p957_p6 = por %p108_p4, %p107_p3 }
   0xa   : > { %p721_p7 = scmp.ge.s32.totalorder %s885_s15, 1  ;;  %p139_p8 = scmp.lt.s32.totalorder %s885_s15, 3 }
   0xc   : > { %p140_p9 = pnand %p721_p7, %p139_p8 }
   0xd   : > { %p162_p10 = scmp.lt.s32.totalorder (!%p140_p9), %s936_s16, 1  ;;  %s159_s6 = sand.u32 (!%p140_p9), 1, %s877_s13  }
   0xe   : > { %143 = sbr.rel (%p140_p9) target bundleno = 301 (0x12d), region = 32  ;;  %s722_s7 = sshll.u32 (!%p140_p9), %s159_s6, 5 }
   0xf   : > { %s1261_s8 = scalar_lea.vmem (!%p140_p9), [#allocation2], %s722_s7  ;;  %s745_s9 = sshll.u32 (!%p140_p9), %s936_s16, 9 }
  0x10   : > { %s659_s10 = sshll.u32 (!%p140_p9), %s1261_s8, 4  ;;  %s1291_s19 = scalar_lea.hbm (!%p140_p9), %s1332_s3, %s745_s9  ;;  %s660_s10 = int_to_ptr.vmem [resolvable:$true] %s659_s10 }
  0x11   : > { %s645_s20 = scalar_lea.sflag (!%p140_p9), [#allocation3], %s159_s6 }
  0x13   : > { %v887_v0 = vmov 0   ;;  %s163_s24 = scalar_select %p162_p10, %s936_s16, 1  ;;  %v174_v2 = vlaneseq  ;;  %v167_v7 = vld [vmem:[%s1330_s1] sm:$0xf]  ;;  %v888_v54 = vmov 683565275  }
  0x14   : > { %808 = vset.pattern.permute.xlu0 %v887_v0  ;;  %v198_v8 = vld [vmem:[%s1331_s2] sm:$0xf]  ;;  %v889_v58 = vmov 2475754826   ;;  %v890_v60 = vmov 2131351028  }
  0x15   : > { %s723_s25 = sshll.u32 %s163_s24, 3  ;;  %v175_v3 = vshrl.u32 %v174_v2, 7  ;;  %v891_v62 = vmov 2102212464   ;;  %v892_v0 = vmov 920167782  }
  0x16   : > { %s165_s28 = scalar_lea.vmem %s1329_s0, %s723_s25  ;;  %s825_s24 = scalar_lea.vmem %s660_s10, 512 }
  0x17   : > { %v166_v1 = vld [vmem:[%s165_s28] sm:$0xff]  ;;  %v176_v4 = vsub.s32 0, %v175_v3  ;;  %v180_v5 = vsub.s32 1, %v175_v3  ;;  %v184_v6 = vsub.s32 2, %v175_v3  ;;  %v188_v19 = vsub.s32 3, %v175_v3  ;;  %p826_p11 = scmp.ne.s32.totalorder %s660_s10, %s825_s24  ;;  %s894_s16 = smov [#allocation2]  }
  0x18   : > { %170 = vperm.xlu0 %808, %v166_v1   ;;  %s829_s25 = sshll.u32 %s894_s16, 4  ;;  %s830_s25 = int_to_ptr.vmem [resolvable:$false] %s829_s25 }
  0x19   : > { %v177_v9 = vrot.slane %v167_v7, %v176_v4  ;;  %v181_v10 = vrot.slane %v167_v7, %v180_v5  ;;  %v185_v11 = vrot.slane %v167_v7, %v184_v6  ;;  %v203_v12 = vrot.slane %v198_v8, %v176_v4  ;;  %p827_p12 = pnand %p826_p11, %p953_p5  ;;  %s831_s26 = scalar_lea.vmem %s830_s25, 1024 }
  0x1a   : > { %v207_v13 = vrot.slane %v198_v8, %v180_v5  ;;  %v211_v15 = vrot.slane %v198_v8, %v184_v6  ;;  %v189_v27 = vrot.slane %v167_v7, %v188_v19  ;;  %v215_v34 = vrot.slane %v198_v8, %v188_v19  ;;  %p832_p0 = scmp.lt.s32.totalorder %s660_s10, %s830_s25  ;;  %p833_p1 = scmp.lt.s32.totalorder %s831_s26, %s825_s24 }
  0x1b   : > { %v893_v7 = vmov 1326507024   ;;  %p828_p13 = pneg %p827_p12 }
  0x1c   : > { %p834_p2 = por %p833_p1, %p832_p0 }
  0x1e   : > { %p835_p3 = pnand %p834_p2, %p828_p13 }
  0x93   : > { %v171_v14 = vpop.permute.xlu0 %170 }
  0x94   : > { %v194_v16 = vmul.f32 %v177_v9, %v171_v14  ;;  %v195_v17 = vmul.f32 %v181_v10, %v171_v14  ;;  %v196_v18 = vmul.f32 %v185_v11, %v171_v14  ;;  %v197_v37 = vmul.f32 %v189_v27, %v171_v14 }
  0x96   : > { %v974_v20 = vadd.f32 %v203_v12, %v194_v16  ;;  %v976_v21 = vadd.f32 %v207_v13, %v195_v17  ;;  %v978_v22 = vadd.f32 %v211_v15, %v196_v18  ;;  %v990_v45 = vadd.f32 %v215_v34, %v197_v37 }
  0x98   : > { %v224_v23 = vand.u32 2147483647, %v974_v20  ;;  %v227_v24 = vand.u32 2139095040, %v974_v20  ;;  %v328_v25 = vand.u32 2147483647, %v976_v21  ;;  %v331_v26 = vand.u32 2139095040, %v976_v21 }
  0x99   : > { %v435_v32 = vand.u32 2139095040, %v978_v22  ;;  %v432_v42 = vand.u32 2147483647, %v978_v22  ;;  %vm226_vm13 = vcmp.lt.s32.totalorder %v974_v20, 0 }
  0x9a   : > { %v228_v28 = vshrl.u32 %v227_v24, 23  ;;  %v231_v29 = vand.u32 8388607, %v224_v23  ;;  %v332_v30 = vshrl.u32 %v331_v26, 23  ;;  %v335_v31 = vand.u32 8388607, %v328_v25 }
  0x9b   : > { %v436_v36 = vshrl.u32 %v435_v32, 23  ;;  %v998_v51 = vand.u32 8388607, %v432_v42  ;;  %vm1103_vm14 = vcmp.le.f32.partialorder %v224_v23, 0.7853982 }
  0x9c   : > { %v724_v33 = vadd.s32 4294967169, %v228_v28  ;;  %v728_v35 = vadd.s32 4294967169, %v332_v30  ;;  %v232_v38 = vor.u32 8388608, %v231_v29  ;;  %v336_v40 = vor.u32 8388608, %v335_v31 }
  0x9d   : > { %v732_v43 = vadd.s32 4294967169, %v436_v36 }
  0x9e   : > { %v234_v39 = vadd.s32 1, %v724_v33  ;;  %v338_v41 = vadd.s32 1, %v728_v35  ;;  %v992_v49 = vshll.u32 %v232_v38, 8  ;;  %v994_v50 = vshll.u32 %v336_v40, 8 }
  0x9f   : > { %v1000_v52 = vadd.s32 1, %v732_v43 }
  0xa0   : > { %vm235_vm0 = vcmp.gt.s32.totalorder %v234_v39, 0  ;;  %vm339_vm1 = vcmp.gt.s32.totalorder %v338_v41, 0 }
  0xa1   : > { %v236_v44 = vsel %vm235_vm0, %v234_v39, 0  ;;  %v340_v48 = vsel %vm339_vm1, %v338_v41, 0  ;;  %vm443_vm6 = vcmp.gt.s32.totalorder %v1000_v52, 0 }
  0xa2   : > { %v237_v46 = vshrl.u32 %v236_v44, 5  ;;  %v238_v47 = vand.u32 31, %v236_v44  ;;  %v1003_v56 = vshrl.u32 %v340_v48, 5  ;;  %v342_v57 = vand.u32 31, %v340_v48 }
  0xa4   : > { %v239_v53 = vsub.s32 32, %v238_v47  ;;  %v241_v55 = vshll.u32 %v888_v54, %v238_v47  ;;  %v244_v59 = vshll.u32 %v889_v58, %v238_v47  ;;  %v247_v61 = vshll.u32 %v890_v60, %v238_v47 }
  0xa5   : > { %v250_v63 = vshll.u32 %v891_v62, %v238_v47  ;;  %v253_v1 = vshll.u32 %v892_v0, %v238_v47  ;;  %vm256_vm2 = vcmp.lt.s32.totalorder %v237_v46, 1  ;;  %vm257_vm3 = vcmp.lt.s32.totalorder %v237_v46, 2 }
  0xa6   : > { %v242_v2 = vshrl.u32 %v889_v58, %v239_v53  ;;  %v245_v3 = vshrl.u32 %v890_v60, %v239_v53  ;;  %v248_v4 = vshrl.u32 %v891_v62, %v239_v53  ;;  %v240_v5 = vshrl.u32 %v888_v54, %v239_v53 }
  0xa7   : > { %v251_v6 = vshrl.u32 %v892_v0, %v239_v53  ;;  %v254_v8 = vshrl.u32 %v893_v7, %v239_v53  ;;  %v343_v12 = vsub.s32 32, %v342_v57  ;;  %vm258_vm4 = vcmp.lt.s32.totalorder %v237_v46, 3 }
  0xa8   : > { %v243_v9 = vor.u32 %v242_v2, %v241_v55  ;;  %v246_v10 = vor.u32 %v245_v3, %v244_v59  ;;  %v249_v11 = vor.u32 %v248_v4, %v247_v61  ;;  %vm259_vm5 = vcmp.lt.s32.totalorder %v237_v46, 4 }
  0xa9   : > { %v252_v13 = vor.u32 %v251_v6, %v250_v63  ;;  %v255_v14 = vor.u32 %v254_v8, %v253_v1  ;;  %v345_v27 = vshll.u32 %v888_v54, %v342_v57  ;;  %v346_v30 = vshrl.u32 %v889_v58, %v343_v12 }
  0xaa   : > { %v260_v15 = vsel %vm256_vm2, %v240_v5, %v243_v9  ;;  %v261_v16 = vsel %vm259_vm5, %v249_v11, 2102212464  ;;  %v264_v17 = vsel %vm256_vm2, %v243_v9, %v246_v10  ;;  %v268_v18 = vsel %vm256_vm2, %v246_v10, %v249_v11 }
  0xab   : > { %v262_v19 = vsel %vm258_vm4, %v246_v10, %v261_v16  ;;  %v265_v24 = vsel %vm259_vm5, %v252_v13, 920167782  ;;  %v269_v26 = vsel %vm259_vm5, %v255_v14, 1326507024  ;;  %v348_v31 = vshll.u32 %v889_v58, %v342_v57 }
  0xac   : > { %v266_v28 = vsel %vm258_vm4, %v249_v11, %v265_v24  ;;  %v270_v29 = vsel %vm258_vm4, %v252_v13, %v269_v26  ;;  %v263_v32 = vsel %vm257_vm3, %v260_v15, %v262_v19  ;;  %v349_v35 = vshrl.u32 %v890_v60, %v343_v12 }
  0xad   : > { %v267_v33 = vsel %vm257_vm3, %v264_v17, %v266_v28  ;;  %v271_v34 = vsel %vm257_vm3, %v268_v18, %v270_v29  ;;  %v347_v40 = vor.u32 %v346_v30, %v345_v27  ;;  %v351_v43 = vshll.u32 %v890_v60, %v342_v57 }
  0xae   : > { %v1027_v36 = vmul.u32.u64.low %v992_v49, %v271_v34  ;;  %v1028_v37 = vmul.u32.u64.high %v992_v49, %v271_v34, %v1027_v36  ;;  %v1031_v38 = vmul.u32.u64.low %v992_v49, %v267_v33  ;;  %v1032_v39 = vmul.u32.u64.high %v992_v49, %v267_v33, %v1031_v38 }
  0xaf   : > { %v350_v41 = vor.u32 %v349_v35, %v348_v31  ;;  %v352_v44 = vshrl.u32 %v891_v62, %v343_v12  ;;  %v344_v46 = vshrl.u32 %v888_v54, %v343_v12  ;;  %v354_v47 = vshll.u32 %v891_v62, %v342_v57 }
  0xb0   : > { %v355_v48 = vshrl.u32 %v892_v0, %v343_v12  ;;  %v358_v53 = vshrl.u32 %v893_v7, %v343_v12  ;;  %v279_v55 = vmul.u32 %v992_v49, %v263_v32  ;;  %v357_v61 = vshll.u32 %v892_v0, %v342_v57 }
  0xb1   : > { %v353_v59 = vor.u32 %v352_v44, %v351_v43  ;;  %vm360_vm7 = vcmp.lt.s32.totalorder %v1003_v56, 1  ;;  %vm281_vm8 = vc.u32 %v1028_v37, %v1031_v38  ;;  %v282_v63 = vadd.s32 1, %v1032_v39 }
  0xb2   : > { %v356_v1 = vor.u32 %v355_v48, %v354_v47  ;;  %vm361_vm9 = vcmp.lt.s32.totalorder %v1003_v56, 2  ;;  %v359_v2 = vor.u32 %v358_v53, %v357_v61  ;;  %vm362_vm10 = vcmp.lt.s32.totalorder %v1003_v56, 3 }
  0xb3   : > { %vm363_vm11 = vcmp.lt.s32.totalorder %v1003_v56, 4  ;;  %v368_v3 = vsel %vm360_vm7, %v347_v40, %v350_v41  ;;  %v283_v49 = vsel %vm281_vm8, %v282_v63, %v1032_v39  ;;  %v372_v5 = vsel %vm360_vm7, %v350_v41, %v353_v59 }
  0xb4   : > { %v365_v4 = vsel %vm363_vm11, %v353_v59, 2102212464  ;;  %v369_v57 = vsel %vm363_vm11, %v356_v1, 920167782  ;;  %v284_v6 = vadd.s32 %v283_v49, %v279_v55  ;;  %v364_v8 = vsel %vm360_vm7, %v344_v46, %v347_v40 }
  0xb5   : > { %v370_v9 = vsel %vm362_vm10, %v353_v59, %v369_v57  ;;  %v373_v10 = vsel %vm363_vm11, %v359_v2, 1326507024  ;;  %v366_v11 = vsel %vm362_vm10, %v350_v41, %v365_v4  ;;  %v444_v14 = vsel %vm443_vm6, %v1000_v52, 0 }
  0xb6   : > { %v371_v12 = vsel %vm361_vm9, %v368_v3, %v370_v9  ;;  %v374_v13 = vsel %vm362_vm10, %v356_v1, %v373_v10  ;;  %v285_v15 = vadd.s32 536870912, %v284_v6  ;;  %v367_v27 = vsel %vm361_vm9, %v364_v8, %v366_v11 }
  0xb7   : > { %v375_v16 = vsel %vm361_vm9, %v372_v5, %v374_v13  ;;  %v1059_v17 = vmul.u32.u64.low %v994_v50, %v371_v12  ;;  %v1060_v18 = vmul.u32.u64.high %v994_v50, %v371_v12, %v1059_v17  ;;  %v446_v28 = vand.u32 31, %v444_v14 }
  0xb8   : > { %v1064_v19 = vmul.u32.u64.low %v994_v50, %v375_v16  ;;  %v1065_v24 = vmul.u32.u64.high %v994_v50, %v375_v16, %v1064_v19  ;;  %v286_v26 = vshrl.u32 %v285_v15, 30  ;;  %v440_v52 = vor.u32 8388608, %v998_v51 }
  0xb9   : > { %v536_v29 = vand.u32 2147483647, %v990_v45  ;;  %v386_v31 = vadd.s32 1, %v1060_v18  ;;  %v447_v32 = vsub.s32 32, %v446_v28  ;;  %v539_v33 = vand.u32 2139095040, %v990_v45 }
  0xba   : > { %v287_v30 = vshll.u32 %v286_v26, 30  ;;  %v383_v34 = vmul.u32 %v994_v50, %v367_v27  ;;  %vm385_vm12 = vc.u32 %v1065_v24, %v1059_v17  ;;  %v1081_v39 = vshll.u32 %v440_v52, 8 }
  0xbb   : > { %v387_v56 = vsel %vm385_vm12, %v386_v31, %v1060_v18  ;;  %v450_v36 = vshrl.u32 %v889_v58, %v447_v32  ;;  %v1085_v40 = vand.u32 8388607, %v536_v29  ;;  %v453_v41 = vshrl.u32 %v890_v60, %v447_v32 }
  0xbc   : > { %v1076_v35 = vsub.s32 %v284_v6, %v287_v30  ;;  %v388_v51 = vadd.s32 %v387_v56, %v383_v34  ;;  %v456_v43 = vshrl.u32 %v891_v62, %v447_v32  ;;  %v540_v44 = vshrl.u32 %v539_v33, 23 }
  0xbd   : > { %v310_v46 = vsub.s32 4, %v286_v26  ;;  %v1090_v48 = vshrl.u32 %v444_v14, 5  ;;  %v449_v53 = vshll.u32 %v888_v54, %v446_v28  ;;  %v452_v59 = vshll.u32 %v889_v58, %v446_v28 }
  0xbe   : > { %v290_v50 = vsub.s32 0, %v1076_v35  ;;  %v389_v47 = vadd.s32 536870912, %v388_v51  ;;  %v455_v61 = vshll.u32 %v890_v60, %v446_v28  ;;  %v459_v63 = vshrl.u32 %v892_v0, %v447_v32 }
  0xbf   : > { %v451_v2 = vor.u32 %v450_v36, %v449_v53  ;;  %v458_v3 = vshll.u32 %v891_v62, %v446_v28  ;;  %v462_v49 = vshrl.u32 %v893_v7, %v447_v32  ;;  %v454_v5 = vor.u32 %v453_v41, %v452_v59 }
  0xc0   : > { %v725_v55 = vmin.u32 %v290_v50, %v1076_v35  ;;  %v1097_v1 = vshrl.u32 %v389_v47, 30  ;;  %v457_v6 = vor.u32 %v456_v43, %v455_v61  ;;  %v461_v8 = vshll.u32 %v892_v0, %v446_v28 }
  0xc1   : > { %v280_v9 = vadd.s32 %v1031_v38, %v1028_v37  ;;  %v460_v11 = vor.u32 %v459_v63, %v458_v3  ;;  %v736_v12 = vadd.s32 4294967169, %v540_v44  ;;  %vm464_vm15 = vcmp.lt.s32.totalorder %v1090_v48, 1 }
  0xc2   : > { %v292_v57 = vclz %v725_v55  ;;  %v391_v10 = vshll.u32 %v1097_v1, 30  ;;  %v463_v14 = vor.u32 %v462_v49, %v461_v8  ;;  %vm467_vm0 = vcmp.lt.s32.totalorder %v1090_v48, 4 }
  0xc3   : > { %vm465_vm1 = vcmp.lt.s32.totalorder %v1090_v48, 2  ;;  %vm466_vm2 = vcmp.lt.s32.totalorder %v1090_v48, 3  ;;  %v473_v15 = vsel %vm467_vm0, %v460_v11, 920167782  ;;  %v311_v37 = vsel %vm226_vm13, %v310_v46, %v286_v26 }
  0xc4   : > { %v726_v13 = vadd.s32 4294967294, %v292_v57  ;;  %v1113_v23 = vsub.s32 %v388_v51, %v391_v10  ;;  %v472_v38 = vsel %vm464_vm15, %v451_v2, %v454_v5  ;;  %v474_v16 = vsel %vm466_vm2, %v457_v6, %v473_v15 }
  0xc5   : > { %v448_v27 = vshrl.u32 %v888_v54, %v447_v32  ;;  %v476_v28 = vsel %vm464_vm15, %v454_v5, %v457_v6  ;;  %v469_v31 = vsel %vm467_vm0, %v457_v6, 2102212464  ;;  %v477_v26 = vsel %vm467_vm0, %v463_v14, 1326507024 }
  0xc6   : > { %vm727_vm3 = vcmp.lt.s32.totalorder %v726_v13, 0  ;;  %v394_v19 = vsub.s32 0, %v1113_v23  ;;  %v475_v56 = vsel %vm465_vm1, %v472_v38, %v474_v16  ;;  %v478_v32 = vsel %vm466_vm2, %v460_v11, %v477_v26 }
  0xc7   : > { %v295_v18 = vsel %vm727_vm3, 0, %v726_v13  ;;  %v479_v50 = vsel %vm465_vm1, %v476_v28, %v478_v32  ;;  %v546_v41 = vadd.s32 1, %v736_v12  ;;  %v313_v43 = vsel %vm1103_vm14, 0, %v311_v37 }
  0xc8   : > { %v296_v52 = vsub.s32 32, %v295_v18  ;;  %v300_v30 = vsub.s32 4294967266, %v295_v18  ;;  %v297_v33 = vshll.u32 %v1076_v35, %v295_v18  ;;  %v729_v34 = vmin.u32 %v394_v19, %v1113_v23 }
  0xc9   : > { %v468_v35 = vsel %vm464_vm15, %v448_v27, %v451_v2  ;;  %v470_v46 = vsel %vm466_vm2, %v454_v5, %v469_v31  ;;  %v1148_v55 = vmul.u32.u64.low %v1081_v39, %v479_v50  ;;  %v1149_v59 = vmul.u32.u64.high %v1081_v39, %v479_v50, %v1148_v55 }
  0xca   : > { %v298_v51 = vshrl.u32 %v280_v9, %v296_v52  ;;  %v301_v36 = vadd.s32 127, %v300_v30  ;;  %v396_v44 = vclz %v729_v34  ;;  %vm547_vm4 = vcmp.gt.s32.totalorder %v546_v41, 0 }
  0xcb   : > { %v1152_v63 = vmul.u32.u64.low %v1081_v39, %v475_v56  ;;  %v1153_v3 = vmul.u32.u64.high %v1081_v39, %v475_v56, %v1152_v63  ;;  %v384_v2 = vadd.s32 %v1059_v17, %v1065_v24  ;;  %v544_v57 = vor.u32 8388608, %v1085_v40 }
  0xcc   : > { %v299_v47 = vor.u32 %v298_v51, %v297_v33  ;;  %v302_v53 = vshll.u32 %v301_v36, 23  ;;  %v730_v61 = vadd.s32 4294967294, %v396_v44  ;;  %v548_v5 = vsel %vm547_vm4, %v546_v41, 0 }
  0xcd   : > { %v317_v6 = vadd.s32 3, %v313_v43  ;;  %v471_v8 = vsel %vm465_vm1, %v468_v35, %v470_v46  ;;  %v550_v9 = vand.u32 31, %v548_v5  ;;  %vm489_vm6 = vc.u32 %v1149_v59, %v1152_v63 }
  0xce   : > { %v303_v49 = vor.u32 4788187, %v302_v53  ;;  %vm731_vm5 = vcmp.lt.s32.totalorder %v730_v61, 0  ;;  %v306_v11 = vcvt.s32.f32 %v299_v47  ;;  %v414_v15 = vsub.s32 4, %v1097_v1 }
  0xcf   : > { %v399_v12 = vsel %vm731_vm5, 0, %v730_v61  ;;  %v490_v17 = vadd.s32 1, %v1153_v3  ;;  %v487_v40 = vmul.u32 %v1081_v39, %v471_v8  ;;  %v1166_v37 = vshrl.u32 %v548_v5, 5 }
  0xd0   : > { %v304_v10 = vand.u32 2147483647, %v303_v49  ;;  %v400_v13 = vsub.s32 32, %v399_v12  ;;  %v404_v14 = vsub.s32 4294967266, %v399_v12  ;;  %v551_v48 = vsub.s32 32, %v550_v9 }
  0xd1   : > { %v401_v38 = vshll.u32 %v1113_v23, %v399_v12  ;;  %v491_v19 = vsel %vm489_vm6, %v490_v17, %v1153_v3  ;;  %v553_v52 = vshll.u32 %v888_v54, %v550_v9  ;;  %v556_v33 = vshll.u32 %v889_v58, %v550_v9 }
  0xd2   : > { %v307_v24 = vmul.f32 %v306_v11, %v304_v10  ;;  %v402_v16 = vshrl.u32 %v384_v2, %v400_v13  ;;  %v405_v18 = vadd.s32 127, %v404_v14  ;;  %v492_v28 = vadd.s32 %v491_v19, %v487_v40 }
  0xd3   : > { %v554_v30 = vshrl.u32 %v889_v58, %v551_v48  ;;  %v557_v39 = vshrl.u32 %v890_v60, %v551_v48  ;;  %v559_v56 = vshll.u32 %v890_v60, %v550_v9  ;;  %v560_v32 = vshrl.u32 %v891_v62, %v551_v48 }
  0xd4   : > { %v308_v27 = vxor.u32 2147483648, %v307_v24  ;;  %v403_v31 = vor.u32 %v402_v16, %v401_v38  ;;  %v406_v26 = vshll.u32 %v405_v18, 23  ;;  %v493_v23 = vadd.s32 536870912, %v492_v28 }
  0xd5   : > { %v555_v50 = vor.u32 %v554_v30, %v553_v52  ;;  %v562_v41 = vshll.u32 %v891_v62, %v550_v9  ;;  %v563_v44 = vshrl.u32 %v892_v0, %v551_v48  ;;  %v558_v46 = vor.u32 %v557_v39, %v556_v33 }
  0xd6   : > { %v309_v34 = vsel %vm226_vm13, %v308_v27, %v307_v24  ;;  %v407_v36 = vor.u32 4788187, %v406_v26  ;;  %v410_v58 = vcvt.s32.f32 %v403_v31  ;;  %v1182_v43 = vshrl.u32 %v493_v23, 30 }
  0xd7   : > { %v312_v51 = vsel %vm1103_vm14, %v974_v20, %v309_v34  ;;  %v566_v60 = vshrl.u32 %v893_v7, %v551_v48  ;;  %vm1188_vm7 = vcmp.le.f32.partialorder %v328_v25, 0.7853982  ;;  %vm330_vm8 = vcmp.lt.s32.totalorder %v976_v21, 0 }
  0xd8   : > { %809 = vcosq.f32 %v312_v51  ;;  %v408_v35 = vand.u32 2147483647, %v407_v36  ;;  %v495_v62 = vshll.u32 %v1182_v43, 30  ;;  %v564_v47 = vor.u32 %v563_v44, %v562_v41 }
  0xd9   : > { %811 = vsinq.f32 %v312_v51  ;;  %v1194_v53 = vand.u32 3, %v317_v6  ;;  %v561_v61 = vor.u32 %v560_v32, %v559_v56  ;;  %v565_v3 = vshll.u32 %v892_v0, %v550_v9 }
  0xda   : > { %v411_v55 = vmul.f32 %v410_v58, %v408_v35  ;;  %v415_v7 = vsel %vm330_vm8, %v414_v15, %v1097_v1  ;;  %v1200_v49 = vsub.s32 %v492_v28, %v495_v62  ;;  %vm568_vm9 = vcmp.lt.s32.totalorder %v1166_v37, 1 }
  0xdb   : > { %v584_v25 = vshll.u32 %v544_v57, 8  ;;  %v567_v5 = vor.u32 %v566_v60, %v565_v3  ;;  %vm571_vm10 = vcmp.lt.s32.totalorder %v1166_v37, 4  ;;  %v576_v6 = vsel %vm568_vm9, %v555_v50, %v558_v46 }
  0xdc   : > { %v412_v2 = vxor.u32 2147483648, %v411_v55  ;;  %v498_v8 = vsub.s32 0, %v1200_v49  ;;  %v552_v0 = vshrl.u32 %v888_v54, %v551_v48  ;;  %vm570_vm11 = vcmp.lt.s32.totalorder %v1166_v37, 3 }
  0xdd   : > { %v577_v1 = vsel %vm571_vm10, %v564_v47, 920167782  ;;  %vm569_vm12 = vcmp.lt.s32.totalorder %v1166_v37, 2  ;;  %v573_v57 = vsel %vm571_vm10, %v561_v61, 2102212464  ;;  %v580_v13 = vsel %vm568_vm9, %v558_v46, %v561_v61 }
  0xde   : > { %v413_v9 = vsel %vm330_vm8, %v412_v2, %v411_v55  ;;  %v578_v10 = vsel %vm570_vm11, %v561_v61, %v577_v1  ;;  %v733_v12 = vmin.u32 %v498_v8, %v1200_v49  ;;  %v581_v14 = vsel %vm571_vm10, %v567_v5, 1326507024 }
  0xdf   : > { %v416_v11 = vsel %vm1188_vm7, %v976_v21, %v413_v9  ;;  %v579_v54 = vsel %vm569_vm12, %v576_v6, %v578_v10  ;;  %v572_v40 = vsel %vm568_vm9, %v552_v0, %v555_v50  ;;  %v574_v48 = vsel %vm570_vm11, %v558_v46, %v573_v57 }
  0xe0   : > { %813 = vcosq.f32 %v416_v11  ;;  %v1222_v15 = vmul.u32.u64.low %v584_v25, %v579_v54  ;;  %v1223_v17 = vmul.u32.u64.high %v584_v25, %v579_v54, %v1222_v15  ;;  %v500_v24 = vclz %v733_v12 }
  0xe1   : > { %815 = vsinq.f32 %v416_v11  ;;  %v582_v38 = vsel %vm570_vm11, %v564_v47, %v581_v14  ;;  %vm316_vm13 = vweird.f32 %v974_v20  ;;  %v417_v16 = vsel %vm1188_vm7, 0, %v415_v7 }
  0xe2   : > { %v734_v18 = vadd.s32 4294967294, %v500_v24  ;;  %v583_v19 = vsel %vm569_vm12, %v580_v13, %v582_v38  ;;  %vm319_vm14 = vcmp.lt.s32.totalorder %v1194_v53, 2  ;;  %vm320_vm15 = vcmp.eq.s32.totalorder %v1194_v53, 0 }
  0xe3   : > { %v1240_v28 = vmul.u32.u64.low %v584_v25, %v583_v19  ;;  %v1241_v52 = vmul.u32.u64.high %v584_v25, %v583_v19, %v1240_v28  ;;  %v575_v26 = vsel %vm569_vm12, %v572_v40, %v574_v48  ;;  %v594_v33 = vadd.s32 1, %v1223_v17 }
  0xe4   : > { %vm735_vm0 = vcmp.lt.s32.totalorder %v734_v18, 0  ;;  %vm323_vm1 = vcmp.eq.s32.totalorder %v1194_v53, 2  ;;  %v421_v34 = vadd.s32 3, %v417_v16  ;;  %v488_v32 = vadd.s32 %v1152_v63, %v1149_v59 }
  0xe5   : > { %v810_v27 = vpop.eup %809  ;;  %v503_v23 = vsel %vm735_vm0, 0, %v734_v18  ;;  %v591_v37 = vmul.u32 %v584_v25, %v575_v26  ;;  %vm593_vm2 = vc.u32 %v1241_v52, %v1222_v15  ;;  %vm420_vm6 = vweird.f32 %v976_v21 }
  0xe6   : > { %v812_v30 = vpop.eup %811  ;;  %v324_v31 = vxor.u32 2147483648, %v810_v27  ;;  %v504_v51 = vsub.s32 32, %v503_v23  ;;  %v508_v36 = vsub.s32 4294967266, %v503_v23  ;;  %v505_v41 = vshll.u32 %v1200_v49, %v503_v23 }
  0xe7   : > { %v321_v39 = vxor.u32 2147483648, %v812_v30  ;;  %v595_v46 = vsel %vm593_vm2, %v594_v33, %v1223_v17  ;;  %v422_v60 = vand.u32 3, %v421_v34  ;;  %vm434_vm7 = vcmp.lt.s32.totalorder %v978_v22, 0 }
  0xe8   : > { %v325_v56 = vsel %vm323_vm1, %v324_v31, %v812_v30  ;;  %v506_v44 = vshrl.u32 %v488_v32, %v504_v51  ;;  %v509_v35 = vadd.s32 127, %v508_v36  ;;  %v596_v63 = vadd.s32 %v595_v46, %v591_v37 }
  0xe9   : > { %v322_v50 = vsel %vm320_vm15, %v810_v27, %v321_v39  ;;  %vm427_vm3 = vcmp.eq.s32.totalorder %v422_v60, 2  ;;  %vm424_vm4 = vcmp.eq.s32.totalorder %v422_v60, 0  ;;  %vm423_vm5 = vcmp.lt.s32.totalorder %v422_v60, 2 }
  0xea   : > { %v326_v58 = vsel %vm319_vm14, %v322_v50, %v325_v56  ;;  %v507_v4 = vor.u32 %v506_v44, %v505_v41  ;;  %v510_v62 = vshll.u32 %v509_v35, 23  ;;  %v597_v47 = vadd.s32 536870912, %v596_v63 }
  0xeb   : > { %v327_v59 = vsel %vm316_vm13, nan, %v326_v58  ;;  %v518_v10 = vsub.s32 4, %v1182_v43  ;;  %vm433_vm8 = vcmp.le.f32.partialorder %v432_v42, 0.7853982  ;;  %v592_v38 = vadd.s32 %v1222_v15, %v1241_v52 }
  0xec   : > { %640 = vst [vmem:[%s1261_s8] sm:$0xff] %v327_v59  ;;  %v511_v61 = vor.u32 4788187, %v510_v62  ;;  %v1264_v7 = vshrl.u32 %v597_v47, 30  ;;  %v514_v20 = vcvt.s32.f32 %v507_v4  ;;  %vm524_vm13 = vweird.f32 %v978_v22 }
  0xed   : > { %v814_v55 = vpop.eup %813  ;;  %v519_v21 = vsel %vm434_vm7, %v518_v10, %v1182_v43  ;;  %vm538_vm14 = vcmp.lt.s32.totalorder %v990_v45, 0  ;;  %vm537_vm15 = vcmp.le.f32.partialorder %v536_v29, 0.7853982 }
  0xee   : > { %v816_v53 = vpop.eup %815  ;;  %v428_v3 = vxor.u32 2147483648, %v814_v55  ;;  %v512_v25 = vand.u32 2147483647, %v511_v61  ;;  %v599_v5 = vshll.u32 %v1264_v7, 30  ;;  %v521_v24 = vsel %vm433_vm8, 0, %v519_v21 }
  0xef   : > { %v425_v49 = vxor.u32 2147483648, %v816_v53  ;;  %v525_v48 = vadd.s32 3, %v521_v24  ;;  %v622_v41 = vsub.s32 4, %v1264_v7 }
  0xf0   : > { %v429_v2 = vsel %vm427_vm3, %v428_v3, %v816_v53  ;;  %v515_v8 = vmul.f32 %v514_v20, %v512_v25  ;;  %v600_v1 = vsub.s32 %v596_v63, %v599_v5  ;;  %vm628_vm3 = vweird.f32 %v990_v45 }
  0xf1   : > { %v426_v6 = vsel %vm424_vm4, %v814_v55, %v425_v49  ;;  %v526_v28 = vand.u32 3, %v525_v48  ;;  %v623_v44 = vsel %vm538_vm14, %v622_v41, %v1264_v7 }
  0xf2   : > { %v430_v0 = vsel %vm423_vm5, %v426_v6, %v429_v2  ;;  %v516_v57 = vxor.u32 2147483648, %v515_v8  ;;  %v602_v11 = vsub.s32 0, %v600_v1 }
  0xf3   : > { %v431_v9 = vsel %vm420_vm6, nan, %v430_v0  ;;  %vm531_vm10 = vcmp.eq.s32.totalorder %v526_v28, 2  ;;  %vm528_vm11 = vcmp.eq.s32.totalorder %v526_v28, 0  ;;  %vm527_vm12 = vcmp.lt.s32.totalorder %v526_v28, 2 }
  0xf4   : > { %641 = vst [vmem:[%s1261_s8 + $0x8] sm:$0xff] %v431_v9  ;;  %v517_v12 = vsel %vm434_vm7, %v516_v57, %v515_v8  ;;  %v737_v13 = vmin.u32 %v602_v11, %v600_v1 }
  0xf5   : > { %v520_v54 = vsel %vm433_vm8, %v978_v22, %v517_v12  ;;  %v625_v22 = vsel %vm537_vm15, 0, %v623_v44 }
  0xf6   : > { %817 = vcosq.f32 %v520_v54  ;;  %v604_v14 = vclz %v737_v13  ;;  %v629_v35 = vadd.s32 3, %v625_v22 }
  0xf7   : > { %819 = vsinq.f32 %v520_v54 }
  0xf8   : > { %v738_v17 = vadd.s32 4294967294, %v604_v14  ;;  %v630_v46 = vand.u32 3, %v629_v35 }
  0xfa   : > { %vm739_vm9 = vcmp.lt.s32.totalorder %v738_v17, 0  ;;  %vm635_vm0 = vcmp.eq.s32.totalorder %v630_v46, 2  ;;  %vm632_vm1 = vcmp.eq.s32.totalorder %v630_v46, 0  ;;  %vm631_vm2 = vcmp.lt.s32.totalorder %v630_v46, 2 }
  0xfb   : > { %v607_v40 = vsel %vm739_vm9, 0, %v738_v17 }
  0xfc   : > { %v608_v16 = vsub.s32 32, %v607_v40  ;;  %v612_v18 = vsub.s32 4294967266, %v607_v40  ;;  %v609_v42 = vshll.u32 %v600_v1, %v607_v40 }
  0xfe   : > { %v610_v19 = vshrl.u32 %v592_v38, %v608_v16  ;;  %v613_v27 = vadd.s32 127, %v612_v18 }
 0x100   : > { %v611_v30 = vor.u32 %v610_v19, %v609_v42  ;;  %v614_v31 = vshll.u32 %v613_v27, 23 }
 0x102   : > { %v615_v43 = vor.u32 4788187, %v614_v31  ;;  %v618_v56 = vcvt.s32.f32 %v611_v30 }
 0x103   : > { %v818_v26 = vpop.eup %817 }
 0x104   : > { %v820_v33 = vpop.eup %819  ;;  %v532_v39 = vxor.u32 2147483648, %v818_v26  ;;  %v616_v23 = vand.u32 2147483647, %v615_v43 }
 0x105   : > { %v529_v34 = vxor.u32 2147483648, %v820_v33 }
 0x106   : > { %v533_v32 = vsel %vm531_vm10, %v532_v39, %v820_v33  ;;  %v619_v52 = vmul.f32 %v618_v56, %v616_v23 }
 0x107   : > { %v530_v15 = vsel %vm528_vm11, %v818_v26, %v529_v34 }
 0x108   : > { %v534_v51 = vsel %vm527_vm12, %v530_v15, %v533_v32  ;;  %v620_v50 = vxor.u32 2147483648, %v619_v52 }
 0x109   : > { %v535_v36 = vsel %vm524_vm13, nan, %v534_v51 }
 0x10a   : > { %642 = vst [vmem:[%s1261_s8 + $0x10] sm:$0xff] %v535_v36  ;;  %v621_v37 = vsel %vm538_vm14, %v620_v50, %v619_v52 }
 0x10b   : > { %v624_v58 = vsel %vm537_vm15, %v990_v45, %v621_v37 }
 0x10c   : > { %821 = vcosq.f32 %v624_v58 }
 0x10d   : > { %823 = vsinq.f32 %v624_v58 }
 0x119   : > { %v822_v59 = vpop.eup %821 }
 0x11a   : > { %v824_v63 = vpop.eup %823  ;;  %v636_v60 = vxor.u32 2147483648, %v822_v59 }
 0x11b   : > { %v633_v4 = vxor.u32 2147483648, %v824_v63 }
 0x11c   : > { %v637_v29 = vsel %vm635_vm0, %v636_v60, %v824_v63 }
 0x11d   : > { %v634_v62 = vsel %vm632_vm1, %v822_v59, %v633_v4 }
 0x11e   : > { %v638_v47 = vsel %vm631_vm2, %v634_v62, %v637_v29 }
 0x11f   : > { %v639_v55 = vsel %vm628_vm3, nan, %v638_v47 }
 0x120   : > { %643 = vst [vmem:[%s1261_s8 + $0x18] sm:$0xff] %v639_v55 }
 0x121   : > { %838 = shalt.err (!%p835_p3)
}
 0x122   : > { %s839_s27 = scalar_lea.hbm %s1291_s19, 512  ;;  %s843_s30 = scalar_lea.hbm %s1332_s3, 1024 }
 0x123   : > { %p840_p4 = scmp.ne.s32.totalorder %s1291_s19, %s839_s27  ;;  %p844_p9 = scmp.lt.s32.totalorder %s1291_s19, %s1332_s3 }
 0x124   : > { %p845_p10 = scmp.lt.s32.totalorder %s843_s30, %s839_s27 }
 0x125   : > { %p841_p7 = pnand %p840_p4, %p953_p5 }
 0x126   : > { %p846_p11 = por %p845_p10, %p844_p9 }
 0x127   : > { %p842_p8 = pneg %p841_p7 }
 0x129   : > { %p847_p12 = pnand %p846_p11, %p842_p8 }
 0x12b   : > { %850 = shalt.err (!%p847_p12)
}
 0x12c   : > { %762 = dma.vmem_to_hbm [thread:$0]  (%p953_p5), %s660_s10, 512, %s1291_s19, %s645_s20  }
 0x12d PF: > { %p768_p13 = scmp.ge.s32.totalorder %s885_s15, 2  ;;  %s671_s6 = sand.u32 1, %s873_s12  }
 0x12e   : > { %s672_s7 = scalar_lea.sflag [#allocation3], %s671_s6 }
 0x12f   : > { %p765_p0 = pnand %p768_p13, %p957_p6 }
 0x131   : > { %p766_p1 = pneg %p765_p0 }
 0x133   : > { %868 = dma.done.wait (%p766_p1), %s672_s7, 512  }
 0x134   : > { %870 = vsyncadd (%p766_p1), %s672_s7, 4294966784  ;;  %p13_p2 = scmp.ge.s32.totalorder %s940_s18, 4   ;;  %s1339_s12 = smov %s877_s13 }
 0x135   : > { %s1340_s13 = smov %s881_s14  ;;  %s1341_s14 = smov %s951_s21 }
 0x136   : > { %s1342_s15 = smov %s940_s18  ;;  %15 = sbr.rel (!%p13_p2) target bundleno = 3 (0x3), region = 67 }
 0x13b   :  { %677 = vsyncpa [#allocation3], 1 }
 0x13c   :  { %679 = vsyncpa [#allocation3 + $0x1], 1 }

</bundles_post_ra>
